<compile_context>
chip_gen: v5e
topology: v5e:2x2
jax: 0.10.0
libtpu: 0.0.40
codegen_flags: <defaults>
</compile_context>

<pallas_src>
import jax
import jax.numpy as jnp
from jax.experimental import pallas as pl
from jax.experimental.pallas import tpu as pltpu


def rnn_kernel(x_ref, wih_ref, b_ref, w12_ref, b12_ref, out_ref):
    """x:(TB,I) f32, wih:(I,3H) bf16, b:(1,3H) f32, w12:(1,H) f32, b12:(1,1)."""
    H = w12_ref.shape[-1]

    # ---- LSTM single step from zero state: one MXU matmul + VPU/EUP gating.
    x_bf = x_ref[...].astype(jnp.bfloat16)                            # (TB, I)
    gates = jnp.dot(x_bf, wih_ref[...],
                    preferred_element_type=jnp.float32) + b_ref[...]  # (TB, 3H)
    i_g = jax.nn.sigmoid(gates[:, 0 * H:1 * H])
    g_g = jnp.tanh(gates[:, 1 * H:2 * H])
    o_g = jax.nn.sigmoid(gates[:, 2 * H:3 * H])
    h = o_g * jnp.tanh(i_g * g_g)                                     # (TB, H)

    # ---- Folded dense2(dense1(.)) projection on the VPU/XLU (no MXU).
    y = jnp.sum(h * w12_ref[...], axis=-1, keepdims=True) + b12_ref[...]
    out_ref[...] = y                                                  # (TB, 1)


def rnn_forward(x, params, *, batch_tile=None):
    """x: (B, i_size) float32; returns (B, 1, 1) float32 (matches PyTorch)."""
    B, I = x.shape
    wih_bf, b_igo, w12_row, b12 = params
    H = w12_row.shape[-1]

    # Batch tile: whole batch while small; for production sizes pick a multiple
    # of 8 (ideally 128-512). Budget ~2 x TB x I x 4B of x buffers against
    # v7x's 64 MiB VMEM (vs 128 MiB on v5e/v6e) -- trivial at these shapes.
    if batch_tile is None:
        batch_tile = B if B <= 512 else 512
    assert B % batch_tile == 0, (B, batch_tile)
    grid = (B // batch_tile,)

    out = pl.pallas_call(
        rnn_kernel,
        out_shape=jax.ShapeDtypeStruct((B, 1), jnp.float32),
        grid=grid,
        in_specs=[
            pl.BlockSpec((batch_tile, I), lambda b: (b, 0)),   # x tile
            pl.BlockSpec((I, 3 * H), lambda b: (0, 0)),        # resident weights
            pl.BlockSpec((1, 3 * H), lambda b: (0, 0)),
            pl.BlockSpec((1, H), lambda b: (0, 0)),
            pl.BlockSpec((1, 1), lambda b: (0, 0)),
        ],
        out_specs=pl.BlockSpec((batch_tile, 1), lambda b: (b, 0)),
        compiler_params=pltpu.CompilerParams(
            dimension_semantics=("parallel",)),
    )(x, wih_bf, b_igo, w12_row, b12)
    return out.reshape(B, 1, 1)


def make_params(key, i_size, h_size):
    """Deterministic synthetic params (PyTorch-style uniform init ranges),
    pre-processed for the kernel: f-gate dropped, dense1/dense2 folded,
    W_ih^T pre-cast to bf16 for the MXU."""
    ks = jax.random.split(key, 7)
    H = h_size
    k_lstm = 1.0 / jnp.sqrt(h_size)
    w_ih = jax.random.uniform(ks[0], (4 * H, i_size), jnp.float32, -k_lstm, k_lstm)
    b_ih = jax.random.uniform(ks[1], (4 * H,), jnp.float32, -k_lstm, k_lstm)
    b_hh = jax.random.uniform(ks[2], (4 * H,), jnp.float32, -k_lstm, k_lstm)
    k1 = 1.0 / jnp.sqrt(8.0)
    w1 = jax.random.uniform(ks[3], (4, 8), jnp.float32, -k1, k1)
    b1 = jax.random.uniform(ks[4], (4,), jnp.float32, -k1, k1)
    k2 = 1.0 / jnp.sqrt(4.0)
    w2 = jax.random.uniform(ks[5], (1, 4), jnp.float32, -k2, k2)
    b2 = jax.random.uniform(ks[6], (1,), jnp.float32, -k2, k2)

    # PyTorch LSTM gate order is (i, f, g, o); drop the dead f gate (c0 == 0).
    wih_t = w_ih.T                                            # (I, 4H)
    wih_igo = jnp.concatenate(
        [wih_t[:, 0:H], wih_t[:, 2 * H:3 * H], wih_t[:, 3 * H:4 * H]], axis=1)
    b_sum = b_ih + b_hh
    b_igo = jnp.concatenate(
        [b_sum[0:H], b_sum[2 * H:3 * H], b_sum[3 * H:4 * H]]).reshape(1, 3 * H)

    # Fold dense1 and dense2 (no nonlinearity in between):
    #   dense2(dense1(h)) = h @ (W1^T @ W2^T) + (b1 @ W2^T + b2)
    w12 = w1.T @ w2.T                                         # (H, 1)
    b12 = (b1 @ w2.T + b2).reshape(1, 1)                      # (1, 1)

    return (
        wih_igo.astype(jnp.bfloat16),   # (I, 3H)  MXU operand (bf16, f32 accum)
        b_igo,                          # (1, 3H)
        w12.reshape(1, H),              # (1, H)   row for VPU broadcast-mul
        b12,                            # (1, 1)
    )


def reference_forward(x, params):
    """Pure-JAX reference of the same math (matched MXU precision: bf16
    operands, f32 accumulation). Divergence from a full-f32 PyTorch forward
    is only the ~1e-3 bf16 operand rounding on the gates matmul."""
    wih_bf, b_igo, w12_row, b12 = params
    H = w12_row.shape[-1]
    gates = jnp.dot(x.astype(jnp.bfloat16), wih_bf,
                    preferred_element_type=jnp.float32) + b_igo
    i = jax.nn.sigmoid(gates[:, 0 * H:1 * H])
    g = jnp.tanh(gates[:, 1 * H:2 * H])
    o = jax.nn.sigmoid(gates[:, 2 * H:3 * H])
    h = o * jnp.tanh(i * g)
    y = jnp.sum(h * w12_row, axis=-1, keepdims=True) + b12
    return y.reshape(x.shape[0], 1, 1)


if __name__ == "__main__":
    # dense1 is nn.Linear(8, 4), so h_size must be 8 for the PyTorch forward
    # to be well-formed; i_size is free.
    I_SIZE, H_SIZE, BATCH = 16, 8, 8

    key = jax.random.PRNGKey(0)
    k_param, k_x = jax.random.split(key)
    params = make_params(k_param, I_SIZE, H_SIZE)
    x = jax.random.normal(k_x, (BATCH, I_SIZE), jnp.float32)

    out = rnn_forward(x, params)
    out = jax.block_until_ready(out)

    ref = reference_forward(x, params)
    assert out.shape == (BATCH, 1, 1), out.shape
    err = float(jnp.max(jnp.abs(out - ref)))
    assert err < 1e-5, f"max abs err {err}"

    print("KERNEL_OK")
</pallas_src>

<mosaic_0001>
module attributes {stable_mosaic.version = 11 : i64} {
  func.func @rnn_kernel(%arg0: i32, %arg1: memref<8x16xf32, #tpu.memory_space<vmem>>, %arg2: memref<16x24xbf16, #tpu.memory_space<vmem>>, %arg3: memref<1x24xf32, #tpu.memory_space<vmem>>, %arg4: memref<1x8xf32, #tpu.memory_space<vmem>>, %arg5: memref<1x1xf32, #tpu.memory_space<vmem>>, %arg6: memref<8x1xf32, #tpu.memory_space<vmem>>) attributes {dimension_semantics = [#tpu.dimension_semantics<parallel>], iteration_bounds = array<i64: 1>, scalar_prefetch = 0 : i64, scratch_operands = 0 : i64, tpu.core_type = #tpu.core_type<tc>, window_params = [{transform_indices = @transform_0, window_bounds = array<i64: 8, 16>}, {pipeline_mode = #tpu.pipeline_mode<synchronous>, transform_indices = @transform_1, window_bounds = array<i64: 16, 24>}, {pipeline_mode = #tpu.pipeline_mode<synchronous>, transform_indices = @transform_2, window_bounds = array<i64: 1, 24>}, {pipeline_mode = #tpu.pipeline_mode<synchronous>, transform_indices = @transform_3, window_bounds = array<i64: 1, 8>}, {pipeline_mode = #tpu.pipeline_mode<synchronous>, transform_indices = @transform_4, window_bounds = array<i64: 1, 1>}, {transform_indices = @transform_5, window_bounds = array<i64: 8, 1>}]} {
    %c0 = arith.constant 0 : index
    %c0_0 = arith.constant 0 : index
    %0 = vector.load %arg1[%c0, %c0_0] : memref<8x16xf32, #tpu.memory_space<vmem>>, vector<8x16xf32>
    %1 = arith.truncf %0 : vector<8x16xf32> to vector<8x16xbf16>
    %c0_1 = arith.constant 0 : index
    %c0_2 = arith.constant 0 : index
    %2 = vector.load %arg2[%c0_1, %c0_2] : memref<16x24xbf16, #tpu.memory_space<vmem>>, vector<16x24xbf16>
    %cst = arith.constant dense<0.000000e+00> : vector<8x24xf32>
    %3 = tpu.matmul %1, %2, %cst {dimension_numbers = #tpu.dot_dimension_numbers<[1], [0], [0], [1], [0, 0, 1, 1], [], []>} : vector<8x16xbf16>, vector<16x24xbf16>, vector<8x24xf32> -> vector<8x24xf32>
    %c0_3 = arith.constant 0 : index
    %c0_4 = arith.constant 0 : index
    %4 = vector.load %arg3[%c0_3, %c0_4] : memref<1x24xf32, #tpu.memory_space<vmem>>, vector<1x24xf32>
    %5 = vector.broadcast %4 : vector<1x24xf32> to vector<8x24xf32>
    %6 = arith.addf %3, %5 : vector<8x24xf32>
    %7 = vector.extract_strided_slice %6 {offsets = [0, 0], sizes = [8, 8], strides = [1, 1]} : vector<8x24xf32> to vector<8x8xf32>
    %8 = arith.negf %7 : vector<8x8xf32>
    %9 = math.exp %8 : vector<8x8xf32>
    %cst_5 = arith.constant 1.000000e+00 : f32
    %10 = vector.broadcast %cst_5 : f32 to vector<8x8xf32>
    %11 = arith.addf %10, %9 : vector<8x8xf32>
    %12 = arith.divf %10, %11 : vector<8x8xf32>
    %13 = vector.extract_strided_slice %6 {offsets = [0, 8], sizes = [8, 8], strides = [1, 1]} : vector<8x24xf32> to vector<8x8xf32>
    %14 = math.tanh %13 : vector<8x8xf32>
    %15 = vector.extract_strided_slice %6 {offsets = [0, 16], sizes = [8, 8], strides = [1, 1]} : vector<8x24xf32> to vector<8x8xf32>
    %16 = arith.negf %15 : vector<8x8xf32>
    %17 = math.exp %16 : vector<8x8xf32>
    %cst_6 = arith.constant 1.000000e+00 : f32
    %18 = vector.broadcast %cst_6 : f32 to vector<8x8xf32>
    %19 = arith.addf %18, %17 : vector<8x8xf32>
    %20 = arith.divf %18, %19 : vector<8x8xf32>
    %21 = arith.mulf %12, %14 : vector<8x8xf32>
    %22 = math.tanh %21 : vector<8x8xf32>
    %23 = arith.mulf %20, %22 : vector<8x8xf32>
    %c0_7 = arith.constant 0 : index
    %c0_8 = arith.constant 0 : index
    %24 = vector.load %arg4[%c0_7, %c0_8] : memref<1x8xf32, #tpu.memory_space<vmem>>, vector<1x8xf32>
    %25 = vector.broadcast %24 : vector<1x8xf32> to vector<8x8xf32>
    %26 = arith.mulf %23, %25 : vector<8x8xf32>
    %cst_9 = arith.constant dense<0.000000e+00> : vector<8xf32>
    %27 = vector.multi_reduction <add>, %26, %cst_9 [1] : vector<8x8xf32> to vector<8xf32>
    %28 = vector.shape_cast %27 : vector<8xf32> to vector<8x1xf32>
    %c0_10 = arith.constant 0 : index
    %c0_11 = arith.constant 0 : index
    %29 = vector.load %arg5[%c0_10, %c0_11] : memref<1x1xf32, #tpu.memory_space<vmem>>, vector<1x1xf32>
    %30 = vector.broadcast %29 : vector<1x1xf32> to vector<8x1xf32>
    %31 = arith.addf %28, %30 : vector<8x1xf32>
    %c0_12 = arith.constant 0 : index
    %c0_13 = arith.constant 0 : index
    %32 = vector.load %arg6[%c0_12, %c0_13] : memref<8x1xf32, #tpu.memory_space<vmem>>, vector<8x1xf32>
    tpu.vector_store %arg6[%c0_12, %c0_13], %31 {strides = array<i32>} : memref<8x1xf32, #tpu.memory_space<vmem>>, vector<8x1xf32>,
    return
  }
  func.func @transform_0(%arg0: i32) -> (i32, i32) {
    %c0_i32 = arith.constant 0 : i32
    %c0_i32_0 = arith.constant 0 : i32
    return %arg0, %c0_i32 : i32, i32
  }
  func.func @transform_1(%arg0: i32) -> (i32, i32) {
    %c0_i32 = arith.constant 0 : i32
    %c0_i32_0 = arith.constant 0 : i32
    %c0_i32_1 = arith.constant 0 : i32
    return %c0_i32, %c0_i32_0 : i32, i32
  }
  func.func @transform_2(%arg0: i32) -> (i32, i32) {
    %c0_i32 = arith.constant 0 : i32
    %c0_i32_0 = arith.constant 0 : i32
    %c0_i32_1 = arith.constant 0 : i32
    return %c0_i32, %c0_i32_0 : i32, i32
  }
  func.func @transform_3(%arg0: i32) -> (i32, i32) {
    %c0_i32 = arith.constant 0 : i32
    %c0_i32_0 = arith.constant 0 : i32
    %c0_i32_1 = arith.constant 0 : i32
    return %c0_i32, %c0_i32_0 : i32, i32
  }
  func.func @transform_4(%arg0: i32) -> (i32, i32) {
    %c0_i32 = arith.constant 0 : i32
    %c0_i32_0 = arith.constant 0 : i32
    %c0_i32_1 = arith.constant 0 : i32
    return %c0_i32, %c0_i32_0 : i32, i32
  }
  func.func @transform_5(%arg0: i32) -> (i32, i32) {
    %c0_i32 = arith.constant 0 : i32
    %c0_i32_0 = arith.constant 0 : i32
    return %arg0, %c0_i32 : i32, i32
  }
}

</mosaic_0001>

<bundles_post_ra>
// kernel: tpu_custom_call.1
= control target key start
LH: loop header
LB: loop body
LE: loop exit
PB: predicated region body
PF: predicated region fallthrough
CT: control target
= control target key end

     0   :  { %s275_s0 = inlined_call_operand.hbm [shape: f32[8,16], index: 0, kind: input, shape index: {}]   ;;  %s276_s1 = inlined_call_operand.hbm [shape: bf16[16,24], index: 1, kind: input, shape index: {}]   ;;  %s277_s2 = inlined_call_operand.vmem [shape: f32[1,24], index: 2, kind: input, shape index: {}]   ;;  %s278_s3 = inlined_call_operand.vmem [shape: f32[1,8], index: 3, kind: input, shape index: {}]   ;;  %s279_s4 = inlined_call_operand.<no memory space> [shape: f32[1,1], index: 4, kind: input, shape index: {}]   ;;  %s280_s5 = inlined_call_operand.vmem [shape: f32[8,1], index: 5, kind: output, shape index: {}]  }
   0x1   :  { %v10_v0 = vstv %s279_s4 }
   0x2   :  { %11 = vst [vmem:[#allocation2] sm:$0x1] %v10_v0 }
   0x3   :  { %12 = vsyncpa [#allocation4], 0  ;;  %s19_s22 = sshll.u32 %s275_s0, 4  ;;  %s20_s22 = int_to_ptr.hbm [resolvable:$true] %s19_s22 }
   0x4   :  { %13 = vsyncpa [#allocation6], 0  ;;  %s220_s23 = smov [#allocation3]   ;;  %s29_s27 = sshll.u32 %s276_s1, 4  ;;  %s30_s27 = int_to_ptr.hbm [resolvable:$true] %s29_s27 }
   0x5   :  { %s21_s24 = sshll.u32 %s220_s23, 4  ;;  %s221_s28 = smov [#allocation5]   ;;  %s22_s24 = int_to_ptr.vmem [resolvable:$true] %s21_s24 }
   0x6   :  { %24 = dma.hbm_to_vmem [thread:$0]  %s20_s22, 128, %s22_s24, [#allocation4]  }
   0x7   :  { %s31_s29 = sshll.u32 %s221_s28, 4  ;;  %s222_s4 = smov 64   ;;  %s32_s29 = int_to_ptr.vmem [resolvable:$true] %s31_s29 }
   0x8   :  { %s223_s30 = smov 4  }
   0x9   :  { %37 = dma.hbm_to_vmem [thread:$0]  %s30_s27, 128, %s32_s29, [#allocation6], %s222_s4, %s222_s4, %s223_s30  }
   0xa   :  { %216 = dma.done.wait [#allocation4], 128  }
   0xb   :  { %217 = vsyncadd [#allocation4], 4294967168 }
   0xc   :  { %218 = dma.done.wait [#allocation6], 128  }
   0xd   :  { %219 = vsyncadd [#allocation6], 4294967168  ;;  %v149_v1 = vld [vmem:[#allocation5] sm:$0xff]  ;;  %v53_v2 = vld [vmem:[#allocation3] sm:$0xff]  ;;  %vm67_vm0 = vcmask 130048   ;;  %s224_s6 = smov 120  }
   0xe   :  { %v54_v3 = vpack.c.bf16 %v53_v2, %v53_v2  ;;  %78 = vmatpush.bf16.msra.mxu0 %v149_v1  ;;  %v157_v4 = vld [vmem:[%s277_s2] ss:$0 sm:$0xff]  ;;  %s225_s9 = smov 16   ;;  %s226_s2 = smov 112   ;;  %vm126_vm5 = vcmask 64512   ;;  %vm135_vm6 = vcmask 7168  }
   0xf   :  { %v158_v13 = vld [vmem:[%s278_s3] ss:$0 sm:$0xff] }
  0x10   :  { %118 = vrot.lane.b32.xlu1 %v158_v13, %s225_s9  ;;  %v159_v32 = vld [vmem:[#allocation2] ss:$0 sm:$0xff] }
  0x11   :  { %147 = vmatmul.msk.bf16.vlgmr.msra.gmra.mxu0 %vm67_vm0, %v54_v3 }
  0x82   :  { %v119_v27 = vpop.permute.xlu1 %118 }
  0x8e   :  { %v80_v5 = vpop.f32.mrf.mxu0 }
  0x8f   :  { %v81_v6 = vadd.f32 %v157_v4, %v80_v5 }
  0x91   :  { %160 = vtanh.f32 %v81_v6  ;;  %v148_v9 = vmul.f32 -1.442695, %v81_v6 }
  0x93   :  { %162 = vpow2.f32 %v148_v9 }
  0x96   :  { %v82_v7 = vpop.f32.mrf.mxu0 }
  0x97   :  { %v161_v8 = vpop.eup %160 }
  0x98   :  { %105 = vrot.lane.b32.xlu0 %v161_v8, %s224_s6 }
  0x99   :  { %v163_v10 = vpop.eup %162 }
  0x9a   :  { %v87_v11 = vadd.f32 1.0, %v163_v10 }
  0x9c   :  { %164 = vrcp.f32 %v87_v11  ;;  %v99_v18 = vand.u32 2147483648, %v87_v11  ;;  %vm93_vm2 = vweird.f32 %v87_v11  ;;  %v97_v19 = vand.u32 2147483647, %v87_v11 }
  0x9e   :  { %v100_v21 = vor.u32 1.1754944e-38, %v99_v18  ;;  %vm98_vm4 = vcmp.eq.f32.partialorder %v97_v19, 8.507059e+37 }
  0xa2   :  { %v165_v12 = vpop.eup %164 }
  0xa3   :  { %v89_v14 = vmul.f32 %v165_v12, %v87_v11  ;;  %vm94_vm1 = vweird.f32 %v165_v12 }
  0xa4   :  { %vm95_vm3 = vmor %vm93_vm2, %vm94_vm1 }
  0xa5   :  { %v90_v15 = vsub.f32 1.0, %v89_v14 }
  0xa7   :  { %v91_v16 = vmul.f32 %v165_v12, %v90_v15 }
  0xa9   :  { %v92_v17 = vadd.f32 %v165_v12, %v91_v16 }
  0xab   :  { %v96_v20 = vsel %vm95_vm3, %v165_v12, %v92_v17 }
  0xac   :  { %v101_v23 = vsel %vm98_vm4, %v100_v21, %v96_v20 }
 0x10a   :  { %v106_v22 = vpop.permute.xlu0 %105 }
 0x10b   :  { %v108_v24 = vmul.f32 %v106_v22, %v101_v23 }
 0x10d   :  { %166 = vtanh.f32 %v108_v24 }
 0x113   :  { %v167_v25 = vpop.eup %166 }
 0x114   :  { %111 = vrot.lane.b32.xlu0 %v167_v25, %s225_s9 }
 0x186   :  { %v112_v26 = vpop.permute.xlu0 %111 }
 0x187   :  { %v114_v28 = vmul.f32 %v112_v26, %v101_v23 }
 0x189   :  { %v121_v29 = vmul.f32 %v119_v27, %v114_v28 }
 0x18b   :  { %123 = vrot.lane.b32.xlu1 %v121_v29, %s226_s2 }
 0x1fd   :  { %v124_v30 = vpop.permute.xlu1 %123 }
 0x1fe   :  { %v127_v31 = vsel %vm126_vm5, %v124_v30, 0.0 }
 0x1ff   :  { %128 = vadd.xlane.f32.xlu2 %v127_v31 }
 0x272   :  { %v129_v33 = vpop.xlane.xlu2 %128 }
 0x273   :  { %v134_v34 = vadd.f32 %v159_v32, %v129_v33 }
 0x275   :  { %136 = vst.msk [vmem:[%s280_s5] sm:$0xff] %vm135_vm6, %v134_v34 }
 0x276   :  { %141 = vsyncpa [#allocation4], 1 }
 0x277   :  { %142 = vsyncpa [#allocation6], 1 }

</bundles_post_ra>
